<compile_context>
chip_gen: v7x
topology: tpu7x:2x2x1
jax: 0.10.0
libtpu: 0.0.40
codegen_flags: <defaults>
</compile_context>

<pallas_src>
import jax
import jax.numpy as jnp
from jax.experimental import pallas as pl
from jax.experimental.pallas import tpu as pltpu


def _round_up(x, m):
    return ((x + m - 1) // m) * m


def _cdiv(a, b):
    return -(-a // b)


# -----------------------------------------------------------------------------
# Parameter packing: 14 tiny tensors -> three padded stacks.
#
#   wx : (in_pad, 2*M)  fused along lanes:
#          cols [0, M)   rows [0, obs+act)  = enc_fc1
#          cols [M, 2M)  rows [0, obs)      = dec_fc1 obs-part
#        (noise / pad rows are zero, so dotting the packed [obs|act|noise|0]
#         activation slab against wx is an exact "concat" matmul.)
#   wh : (5, M, M) slots: 0=enc_fc2, 1=[mean_fc|log_var_fc] (lane-padded),
#        2=dec_fc1 z-part (row-padded), 3=dec_fc2, 4=dec_fc3 (lane-padded).
#   b  : (5, 2*M) rows: 0=[b_e1|b_d1] (2M wide), 1=b_e2, 2=[b_mu|b_lv],
#        3=b_d2, 4=b_d3 (rows 1-4 use the first M lanes, rest zero).
# -----------------------------------------------------------------------------
def pack_vae_params(p, obs_dim, action_dim, latent_size, dtype=jnp.float32):
    M = p["w_e2"].shape[0]
    in_w = obs_dim + action_dim + latent_size
    in_pad = _round_up(in_w, 16)  # sublane granule, safe for f32 (8) and bf16 (16)

    # TODO(synk): fall back to unpacked per-layer tensors if 2*latent, latent
    # or action_dim ever exceed M (never the case for the rlkit VAE, M=750).
    assert M >= 2 * latent_size and M >= latent_size and M >= action_dim

    wx = jnp.zeros((in_pad, 2 * M), jnp.float32)
    wx = wx.at[:obs_dim + action_dim, :M].set(p["w_e1"])
    wx = wx.at[:obs_dim, M:].set(p["w_d1"][:obs_dim])

    wh = jnp.zeros((5, M, M), jnp.float32)
    wh = wh.at[0].set(p["w_e2"])
    wh = wh.at[1, :, :latent_size].set(p["w_mu"])
    wh = wh.at[1, :, latent_size:2 * latent_size].set(p["w_lv"])
    wh = wh.at[2, :latent_size, :].set(p["w_d1"][obs_dim:])
    wh = wh.at[3].set(p["w_d2"])
    wh = wh.at[4, :, :action_dim].set(p["w_d3"])

    b = jnp.zeros((5, 2 * M), jnp.float32)
    b = b.at[0, :M].set(p["b_e1"])
    b = b.at[0, M:].set(p["b_d1"])
    b = b.at[1, :M].set(p["b_e2"])
    b = b.at[2, :latent_size].set(p["b_mu"])
    b = b.at[2, latent_size:2 * latent_size].set(p["b_lv"])
    b = b.at[3, :M].set(p["b_d2"])
    b = b.at[4, :action_dim].set(p["b_d3"])

    return wx.astype(dtype), wh.astype(dtype), b.astype(dtype)


@jax.jit
def vae_forward(obs, act, noise, wx, wh, b):
    """Fused VAE forward. Returns (act_hat, mean, std)."""
    batch, obs_dim = obs.shape
    action_dim = act.shape[1]
    latent = noise.shape[1]
    in_pad, two_m = wx.shape
    M = two_m // 2
    n_h = wh.shape[0]
    in_w = obs_dim + action_dim + latent
    noise_lo = obs_dim + action_dim

    # Re-assert packing invariants here too (review correctness concern).
    assert in_pad >= in_w
    assert M >= 2 * latent and M >= latent and M >= action_dim

    pdt = wx.dtype            # MXU-operand dtype (f32 or bf16)
    f32 = jnp.float32
    itemsize = jnp.dtype(pdt).itemsize

    out_used = action_dim + 2 * latent
    out_w = _round_up(out_used, 128)          # lane-dense, unmasked stores

    # ---- batch tiling: big tiles, full blocks, >=2 blocks for huge batches ----
    TB_CAP = 4096
    n_blk = max(1, _cdiv(batch, TB_CAP))      # >= 2 blocks only when batch > 4096
    tb = _round_up(_cdiv(batch, n_blk), 16)   # 16-row granule (bf16-safe)
    batch_pad = tb * n_blk
    grid = (n_blk,)

    # Pack [obs | act | noise | 0] into one lane-contiguous slab; zero-pad the
    # batch so every grid block is full (no garbage rows -> no spurious NaNs).
    x = jnp.concatenate([obs, act, noise], axis=1).astype(pdt)
    x = jnp.pad(x, ((0, batch_pad - batch), (0, in_pad - in_w)))

    def kernel(x_ref, wx_ref, wh_ref, b_ref, o_ref):
        xv = x_ref[...]                                         # (tb, in_pad)

        # ---- fused enc_fc1 + dec_fc1(obs): one (tb, 2M) matmul ----
        # Noise/pad lanes of xv hit zero weight rows -> exact concat matmuls.
        xw = jnp.dot(xv, wx_ref[...], preferred_element_type=f32) + b_ref[0:1, :]
        h = jnp.maximum(xw[:, :M], 0.0)        # encoder fc1 + relu
        d_obs = xw[:, M:]                      # decoder fc1 obs part (+ b_d1)

        # ---- enc_fc2 + relu ----
        h = jnp.dot(h.astype(pdt), wh_ref[0], preferred_element_type=f32)
        h = jnp.maximum(h + b_ref[1:2, :M], 0.0)

        # ---- fused latent heads: [mean | log_var] in one matmul ----
        heads = (jnp.dot(h.astype(pdt), wh_ref[1], preferred_element_type=f32)
                 + b_ref[2:3, :M])
        mean = heads[:, :latent]
        log_var = jnp.clip(heads[:, latent:2 * latent], -4.0, 15.0)
        std = jnp.exp(log_var)                 # matches reference (no 0.5 factor)
        nz = xv[:, noise_lo:noise_lo + latent].astype(f32)
        z = mean + std * nz                    # reparameterization (external randn)

        # ---- decoder fc1: obs part (already biased) + z part, one add chain ----
        if M > latent:                         # zero rows in slot 2 make this exact
            z_in = jnp.concatenate([z, jnp.zeros((tb, M - latent), f32)], axis=1)
        else:
            z_in = z
        d = jnp.maximum(
            d_obs + jnp.dot(z_in.astype(pdt), wh_ref[2], preferred_element_type=f32),
            0.0)
        # ---- dec_fc2 + relu ----
        d = jnp.dot(d.astype(pdt), wh_ref[3], preferred_element_type=f32)
        d = jnp.maximum(d + b_ref[3:4, :M], 0.0)
        # ---- dec_fc3 + tanh (only the first action_dim columns matter) ----
        d = (jnp.dot(d.astype(pdt), wh_ref[4], preferred_element_type=f32)
             + b_ref[4:5, :M])
        act_hat = jnp.tanh(d[:, :action_dim])

        # ---- ONE lane-dense output store: [act_hat | mean | std | 0-pad] ----
        pieces = [act_hat, mean, std]
        if out_w > out_used:
            pieces.append(jnp.zeros((tb, out_w - out_used), f32))
        o_ref[...] = jnp.concatenate(pieces, axis=1)

    cost = pl.CostEstimate(
        flops=2 * batch_pad * (in_pad * 2 * M + 5 * M * M),
        transcendentals=batch_pad * (latent + action_dim),
        bytes_accessed=(x.size * itemsize + wx.size * itemsize
                        + wh.size * itemsize + b.size * itemsize
                        + batch_pad * out_w * 4),
    )

    out = pl.pallas_call(
        kernel,
        out_shape=jax.ShapeDtypeStruct((batch_pad, out_w), jnp.float32),
        grid=grid,
        in_specs=[
            pl.BlockSpec((tb, in_pad), lambda i: (i, 0)),
            pl.BlockSpec((in_pad, 2 * M), lambda i: (0, 0)),
            pl.BlockSpec((n_h, M, M), lambda i: (0, 0, 0)),
            pl.BlockSpec((5, 2 * M), lambda i: (0, 0)),
        ],
        out_specs=pl.BlockSpec((tb, out_w), lambda i: (i, 0)),
        compiler_params=pltpu.CompilerParams(dimension_semantics=("parallel",)),
        cost_estimate=cost,
    )(x, wx, wh, b)

    act_hat = out[:batch, :action_dim]
    mean = out[:batch, action_dim:action_dim + latent]
    std = out[:batch, action_dim + latent:action_dim + 2 * latent]
    return act_hat, mean, std


def init_params(key, obs_dim, action_dim, latent_size, M):
    """Deterministic synthetic init (torch-default-like uniform scale)."""
    def lin(k, fan_in, fan_out):
        kw, kb = jax.random.split(k)
        bound = fan_in ** -0.5
        w = jax.random.uniform(kw, (fan_in, fan_out), jnp.float32, -bound, bound)
        bb = jax.random.uniform(kb, (fan_out,), jnp.float32, -bound, bound)
        return w, bb

    keys = jax.random.split(key, 7)
    w_e1, b_e1 = lin(keys[0], obs_dim + action_dim, M)
    w_e2, b_e2 = lin(keys[1], M, M)
    w_mu, b_mu = lin(keys[2], M, latent_size)
    w_lv, b_lv = lin(keys[3], M, latent_size)
    w_d1, b_d1 = lin(keys[4], obs_dim + latent_size, M)
    w_d2, b_d2 = lin(keys[5], M, M)
    w_d3, b_d3 = lin(keys[6], M, action_dim)
    return dict(w_e1=w_e1, b_e1=b_e1, w_e2=w_e2, b_e2=b_e2,
                w_mu=w_mu, b_mu=b_mu, w_lv=w_lv, b_lv=b_lv,
                w_d1=w_d1, b_d1=b_d1, w_d2=w_d2, b_d2=b_d2,
                w_d3=w_d3, b_d3=b_d3)


def vae_forward_ref(obs, act, noise, p):
    """Pure-JAX reference mirroring the PyTorch forward, for verification."""
    relu = lambda v: jnp.maximum(v, 0.0)
    h = relu(jnp.concatenate([obs, act], 1) @ p["w_e1"] + p["b_e1"])
    h = relu(h @ p["w_e2"] + p["b_e2"])
    mean = h @ p["w_mu"] + p["b_mu"]
    log_var = jnp.clip(h @ p["w_lv"] + p["b_lv"], -4.0, 15.0)
    std = jnp.exp(log_var)
    z = mean + std * noise
    d = relu(jnp.concatenate([obs, z], 1) @ p["w_d1"] + p["b_d1"])
    d = relu(d @ p["w_d2"] + p["b_d2"])
    act_hat = jnp.tanh(d @ p["w_d3"] + p["b_d3"])
    return act_hat, mean, std


if __name__ == "__main__":
    # Small shapes consistent with the module: obs_dim=16, action_dim=8,
    # latent_size=4, hidden M=32, batch=2.
    batch, obs_dim, action_dim, latent_size, M = 2, 16, 8, 4, 32

    key = jax.random.PRNGKey(0)
    k_obs, k_act, k_noise, k_params = jax.random.split(key, 4)

    obs = jax.random.normal(k_obs, (batch, obs_dim), jnp.float32)
    act = jax.random.normal(k_act, (batch, action_dim), jnp.float32)
    # torch.randn_like(std) equivalent: externally drawn standard-normal noise.
    noise = jax.random.normal(k_noise, (batch, latent_size), jnp.float32)

    params = init_params(k_params, obs_dim, action_dim, latent_size, M)
    r_act_hat, r_mean, r_std = vae_forward_ref(obs, act, noise, params)

    # ---- f32 packing: exact-match path (tight tolerance) ----
    wx, wh, b = pack_vae_params(params, obs_dim, action_dim, latent_size,
                                dtype=jnp.float32)
    a1, m1, s1 = vae_forward(obs, act, noise, wx, wh, b)
    jax.block_until_ready((a1, m1, s1))
    assert jnp.allclose(a1, r_act_hat, atol=1e-5, rtol=1e-5)
    assert jnp.allclose(m1, r_mean, atol=1e-5, rtol=1e-5)
    assert jnp.allclose(s1, r_std, atol=1e-5, rtol=1e-5)

    # ---- bf16 packing: halves DMA bytes / doubles MXU rate (v6e/v7x); all
    # elementwise math stays f32 in-kernel (v5e-safe). Loose tolerance. ----
    wx16, wh16, b16 = pack_vae_params(params, obs_dim, action_dim, latent_size,
                                      dtype=jnp.bfloat16)
    a2, m2, s2 = vae_forward(obs, act, noise, wx16, wh16, b16)
    jax.block_until_ready((a2, m2, s2))
    assert jnp.allclose(a2, r_act_hat, atol=5e-2, rtol=5e-2)
    assert jnp.allclose(m2, r_mean, atol=5e-2, rtol=5e-2)
    assert jnp.allclose(s2, r_std, atol=5e-2, rtol=5e-2)

    print("KERNEL_OK")
</pallas_src>

<mosaic_0001>
module attributes {stable_mosaic.version = 11 : i64} {
  func.func @kernel(%arg0: i32, %arg1: memref<16x32xf32, #tpu.memory_space<vmem>>, %arg2: memref<32x64xf32, #tpu.memory_space<vmem>>, %arg3: memref<5x32x32xf32, #tpu.memory_space<vmem>>, %arg4: memref<5x64xf32, #tpu.memory_space<vmem>>, %arg5: memref<16x128xf32, #tpu.memory_space<vmem>>) attributes {dimension_semantics = [#tpu.dimension_semantics<parallel>], iteration_bounds = array<i64: 1>, scalar_prefetch = 0 : i64, scratch_operands = 0 : i64, tpu.core_type = #tpu.core_type<tc>, window_params = [{transform_indices = @transform_0, window_bounds = array<i64: 16, 32>}, {pipeline_mode = #tpu.pipeline_mode<synchronous>, transform_indices = @transform_1, window_bounds = array<i64: 32, 64>}, {pipeline_mode = #tpu.pipeline_mode<synchronous>, transform_indices = @transform_2, window_bounds = array<i64: 5, 32, 32>}, {pipeline_mode = #tpu.pipeline_mode<synchronous>, transform_indices = @transform_3, window_bounds = array<i64: 5, 64>}, {transform_indices = @transform_4, window_bounds = array<i64: 16, 128>}]} {
    %c0 = arith.constant 0 : index
    %c0_0 = arith.constant 0 : index
    %0 = vector.load %arg1[%c0, %c0_0] : memref<16x32xf32, #tpu.memory_space<vmem>>, vector<16x32xf32>
    %c0_1 = arith.constant 0 : index
    %c0_2 = arith.constant 0 : index
    %1 = vector.load %arg2[%c0_1, %c0_2] : memref<32x64xf32, #tpu.memory_space<vmem>>, vector<32x64xf32>
    %cst = arith.constant dense<0.000000e+00> : vector<16x64xf32>
    %2 = tpu.matmul %0, %1, %cst {dimension_numbers = #tpu.dot_dimension_numbers<[1], [0], [0], [1], [0, 0, 1, 1], [], []>} : vector<16x32xf32>, vector<32x64xf32>, vector<16x64xf32> -> vector<16x64xf32>
    %c0_3 = arith.constant 0 : index
    %c0_4 = arith.constant 0 : index
    %3 = vector.load %arg4[%c0_3, %c0_4] : memref<5x64xf32, #tpu.memory_space<vmem>>, vector<1x64xf32>
    %4 = vector.broadcast %3 : vector<1x64xf32> to vector<16x64xf32>
    %5 = arith.addf %2, %4 : vector<16x64xf32>
    %6 = vector.extract_strided_slice %5 {offsets = [0, 0], sizes = [16, 32], strides = [1, 1]} : vector<16x64xf32> to vector<16x32xf32>
    %cst_5 = arith.constant 0.000000e+00 : f32
    %7 = vector.broadcast %cst_5 : f32 to vector<16x32xf32>
    %8 = arith.maximumf %6, %7 : vector<16x32xf32>
    %9 = vector.extract_strided_slice %5 {offsets = [0, 32], sizes = [16, 32], strides = [1, 1]} : vector<16x64xf32> to vector<16x32xf32>
    %c0_6 = arith.constant 0 : index
    %c0_7 = arith.constant 0 : index
    %c0_8 = arith.constant 0 : index
    %10 = vector.load %arg3[%c0_6, %c0_7, %c0_8] : memref<5x32x32xf32, #tpu.memory_space<vmem>>, vector<1x32x32xf32>
    %11 = vector.shape_cast %10 : vector<1x32x32xf32> to vector<32x32xf32>
    %cst_9 = arith.constant dense<0.000000e+00> : vector<16x32xf32>
    %12 = tpu.matmul %8, %11, %cst_9 {dimension_numbers = #tpu.dot_dimension_numbers<[1], [0], [0], [1], [0, 0, 1, 1], [], []>} : vector<16x32xf32>, vector<32x32xf32>, vector<16x32xf32> -> vector<16x32xf32>
    %c1 = arith.constant 1 : index
    %c0_10 = arith.constant 0 : index
    %13 = vector.load %arg4[%c1, %c0_10] : memref<5x64xf32, #tpu.memory_space<vmem>>, vector<1x32xf32>
    %14 = vector.broadcast %13 : vector<1x32xf32> to vector<16x32xf32>
    %15 = arith.addf %12, %14 : vector<16x32xf32>
    %cst_11 = arith.constant 0.000000e+00 : f32
    %16 = vector.broadcast %cst_11 : f32 to vector<16x32xf32>
    %17 = arith.maximumf %15, %16 : vector<16x32xf32>
    %c1_12 = arith.constant 1 : index
    %c0_13 = arith.constant 0 : index
    %c0_14 = arith.constant 0 : index
    %18 = vector.load %arg3[%c1_12, %c0_13, %c0_14] : memref<5x32x32xf32, #tpu.memory_space<vmem>>, vector<1x32x32xf32>
    %19 = vector.shape_cast %18 : vector<1x32x32xf32> to vector<32x32xf32>
    %cst_15 = arith.constant dense<0.000000e+00> : vector<16x32xf32>
    %20 = tpu.matmul %17, %19, %cst_15 {dimension_numbers = #tpu.dot_dimension_numbers<[1], [0], [0], [1], [0, 0, 1, 1], [], []>} : vector<16x32xf32>, vector<32x32xf32>, vector<16x32xf32> -> vector<16x32xf32>
    %c2 = arith.constant 2 : index
    %c0_16 = arith.constant 0 : index
    %21 = vector.load %arg4[%c2, %c0_16] : memref<5x64xf32, #tpu.memory_space<vmem>>, vector<1x32xf32>
    %22 = vector.broadcast %21 : vector<1x32xf32> to vector<16x32xf32>
    %23 = arith.addf %20, %22 : vector<16x32xf32>
    %24 = vector.extract_strided_slice %23 {offsets = [0, 0], sizes = [16, 4], strides = [1, 1]} : vector<16x32xf32> to vector<16x4xf32>
    %25 = vector.extract_strided_slice %23 {offsets = [0, 4], sizes = [16, 4], strides = [1, 1]} : vector<16x32xf32> to vector<16x4xf32>
    %cst_17 = arith.constant -4.000000e+00 : f32
    %cst_18 = arith.constant 1.500000e+01 : f32
    %26 = vector.broadcast %cst_17 : f32 to vector<16x4xf32>
    %27 = arith.maximumf %26, %25 : vector<16x4xf32>
    %28 = vector.broadcast %cst_18 : f32 to vector<16x4xf32>
    %29 = arith.minimumf %28, %27 : vector<16x4xf32>
    %30 = math.exp %29 : vector<16x4xf32>
    %31 = vector.extract_strided_slice %0 {offsets = [0, 24], sizes = [16, 4], strides = [1, 1]} : vector<16x32xf32> to vector<16x4xf32>
    %32 = arith.mulf %30, %31 : vector<16x4xf32>
    %33 = arith.addf %24, %32 : vector<16x4xf32>
    %cst_19 = arith.constant 0.000000e+00 : f32
    %34 = vector.broadcast %cst_19 : f32 to vector<16x28xf32>
    %35 = tpu.concatenate %33, %34 in 1 : vector<16x4xf32>, vector<16x28xf32> -> vector<16x32xf32>
    %c2_20 = arith.constant 2 : index
    %c0_21 = arith.constant 0 : index
    %c0_22 = arith.constant 0 : index
    %36 = vector.load %arg3[%c2_20, %c0_21, %c0_22] : memref<5x32x32xf32, #tpu.memory_space<vmem>>, vector<1x32x32xf32>
    %37 = vector.shape_cast %36 : vector<1x32x32xf32> to vector<32x32xf32>
    %cst_23 = arith.constant dense<0.000000e+00> : vector<16x32xf32>
    %38 = tpu.matmul %35, %37, %cst_23 {dimension_numbers = #tpu.dot_dimension_numbers<[1], [0], [0], [1], [0, 0, 1, 1], [], []>} : vector<16x32xf32>, vector<32x32xf32>, vector<16x32xf32> -> vector<16x32xf32>
    %39 = arith.addf %9, %38 : vector<16x32xf32>
    %cst_24 = arith.constant 0.000000e+00 : f32
    %40 = vector.broadcast %cst_24 : f32 to vector<16x32xf32>
    %41 = arith.maximumf %39, %40 : vector<16x32xf32>
    %c3 = arith.constant 3 : index
    %c0_25 = arith.constant 0 : index
    %c0_26 = arith.constant 0 : index
    %42 = vector.load %arg3[%c3, %c0_25, %c0_26] : memref<5x32x32xf32, #tpu.memory_space<vmem>>, vector<1x32x32xf32>
    %43 = vector.shape_cast %42 : vector<1x32x32xf32> to vector<32x32xf32>
    %cst_27 = arith.constant dense<0.000000e+00> : vector<16x32xf32>
    %44 = tpu.matmul %41, %43, %cst_27 {dimension_numbers = #tpu.dot_dimension_numbers<[1], [0], [0], [1], [0, 0, 1, 1], [], []>} : vector<16x32xf32>, vector<32x32xf32>, vector<16x32xf32> -> vector<16x32xf32>
    %c3_28 = arith.constant 3 : index
    %c0_29 = arith.constant 0 : index
    %45 = vector.load %arg4[%c3_28, %c0_29] : memref<5x64xf32, #tpu.memory_space<vmem>>, vector<1x32xf32>
    %46 = vector.broadcast %45 : vector<1x32xf32> to vector<16x32xf32>
    %47 = arith.addf %44, %46 : vector<16x32xf32>
    %cst_30 = arith.constant 0.000000e+00 : f32
    %48 = vector.broadcast %cst_30 : f32 to vector<16x32xf32>
    %49 = arith.maximumf %47, %48 : vector<16x32xf32>
    %c4 = arith.constant 4 : index
    %c0_31 = arith.constant 0 : index
    %c0_32 = arith.constant 0 : index
    %50 = vector.load %arg3[%c4, %c0_31, %c0_32] : memref<5x32x32xf32, #tpu.memory_space<vmem>>, vector<1x32x32xf32>
    %51 = vector.shape_cast %50 : vector<1x32x32xf32> to vector<32x32xf32>
    %cst_33 = arith.constant dense<0.000000e+00> : vector<16x32xf32>
    %52 = tpu.matmul %49, %51, %cst_33 {dimension_numbers = #tpu.dot_dimension_numbers<[1], [0], [0], [1], [0, 0, 1, 1], [], []>} : vector<16x32xf32>, vector<32x32xf32>, vector<16x32xf32> -> vector<16x32xf32>
    %c4_34 = arith.constant 4 : index
    %c0_35 = arith.constant 0 : index
    %53 = vector.load %arg4[%c4_34, %c0_35] : memref<5x64xf32, #tpu.memory_space<vmem>>, vector<1x32xf32>
    %54 = vector.broadcast %53 : vector<1x32xf32> to vector<16x32xf32>
    %55 = arith.addf %52, %54 : vector<16x32xf32>
    %56 = vector.extract_strided_slice %55 {offsets = [0, 0], sizes = [16, 8], strides = [1, 1]} : vector<16x32xf32> to vector<16x8xf32>
    %57 = math.tanh %56 : vector<16x8xf32>
    %cst_36 = arith.constant 0.000000e+00 : f32
    %58 = vector.broadcast %cst_36 : f32 to vector<16x112xf32>
    %59 = tpu.concatenate %57, %24, %30, %58 in 1 : vector<16x8xf32>, vector<16x4xf32>, vector<16x4xf32>, vector<16x112xf32> -> vector<16x128xf32>
    %c0_37 = arith.constant 0 : index
    %c0_38 = arith.constant 0 : index
    %60 = vector.load %arg5[%c0_37, %c0_38] : memref<16x128xf32, #tpu.memory_space<vmem>>, vector<16x128xf32>
    tpu.vector_store %arg5[%c0_37, %c0_38], %59 {strides = array<i32>} : memref<16x128xf32, #tpu.memory_space<vmem>>, vector<16x128xf32>,
    return
  }
  func.func @transform_0(%arg0: i32) -> (i32, i32) {
    %c0_i32 = arith.constant 0 : i32
    %c0_i32_0 = arith.constant 0 : i32
    return %arg0, %c0_i32 : i32, i32
  }
  func.func @transform_1(%arg0: i32) -> (i32, i32) {
    %c0_i32 = arith.constant 0 : i32
    %c0_i32_0 = arith.constant 0 : i32
    %c0_i32_1 = arith.constant 0 : i32
    return %c0_i32, %c0_i32_0 : i32, i32
  }
  func.func @transform_2(%arg0: i32) -> (i32, i32, i32) {
    %c0_i32 = arith.constant 0 : i32
    %c0_i32_0 = arith.constant 0 : i32
    %c0_i32_1 = arith.constant 0 : i32
    %c0_i32_2 = arith.constant 0 : i32
    return %c0_i32, %c0_i32_0, %c0_i32_1 : i32, i32, i32
  }
  func.func @transform_3(%arg0: i32) -> (i32, i32) {
    %c0_i32 = arith.constant 0 : i32
    %c0_i32_0 = arith.constant 0 : i32
    %c0_i32_1 = arith.constant 0 : i32
    return %c0_i32, %c0_i32_0 : i32, i32
  }
  func.func @transform_4(%arg0: i32) -> (i32, i32) {
    %c0_i32 = arith.constant 0 : i32
    %c0_i32_0 = arith.constant 0 : i32
    return %arg0, %c0_i32 : i32, i32
  }
}

</mosaic_0001>

<bundles_post_ra>
// kernel: vae_forward.1
= control target key start
LH: loop header
LB: loop body
LE: loop exit
PB: predicated region body
PF: predicated region fallthrough
CT: control target
= control target key end

     0   :  { %9 = vsyncpa [#allocation3], 0  ;;  %s864_s15 = smov [#allocation2]   ;;  %s972_s0 = inlined_call_operand.vmem [shape: f32[16,32], index: 0, kind: input, shape index: {}]   ;;  %s973_s1 = inlined_call_operand.vmem [shape: f32[32,64], index: 1, kind: input, shape index: {}]   ;;  %s974_s2 = inlined_call_operand.hbm [shape: f32[5,32,32], index: 2, kind: input, shape index: {}]   ;;  %s975_s3 = inlined_call_operand.vmem [shape: f32[5,64], index: 3, kind: input, shape index: {}]   ;;  %s976_s4 = inlined_call_operand.vmem [shape: f32[16,128], index: 4, kind: output, shape index: {}]  }
   0x1   :  { %s19_s16 = sshll.u32 %s864_s15, 4  ;;  %s840_s19 = scalar_lea.hbm %s974_s2, 2560  ;;  %s20_s16 = int_to_ptr.vmem [resolvable:$true] %s19_s16 }
   0x2   :  { %p841_p0 = scmp.ne.s32.totalorder %s974_s2, %s840_s19  ;;  %p844_p1 = scmp.lt.u32.totalorder %s840_s19, %s974_s2 }
   0x4   :  { %p846_p2 = pnand %p844_p1, %p841_p0 }
   0x6   :  { %849 = shalt.err (!%p846_p2)
}
   0x7   :  { %s850_s24 = scalar_lea.vmem %s20_s16, 2560  ;;  %p855_p4 = scmp.lt.s32.totalorder %s20_s16, %s20_s16 }
   0x8   :  { %p851_p3 = scmp.ne.s32.totalorder %s20_s16, %s850_s24  ;;  %p856_p5 = scmp.lt.s32.totalorder %s850_s24, %s850_s24 }
   0xa   :  { %p857_p6 = por %p856_p5, %p855_p4 }
   0xc   :  { %p858_p7 = pnand %p857_p6, %p851_p3 }
   0xe   :  { %861 = shalt.err (!%p858_p7)
}
   0xf   :  { %s865_s25 = smov 128   ;;  %s866_s26 = smov 8  }
  0x10   :  { %25 = dma.hbm_to_vmem [thread:$0]  %s974_s2, 2560, %s20_s16, [#allocation3], %s865_s25, %s865_s25, %s866_s26  }
  0x11   :  { %862 = dma.done.wait [#allocation3], 2560  }
  0x12   :  { %863 = vsyncadd [#allocation3], 4294964736  ;;  %vm42_vm0 = vcmask 261120   ;;  %v33_v0 = vld [vmem:[%s973_s1] sm:$0xff]  ;;  %v34_v1 = vld [vmem:[%s973_s1 + $0x8] sm:$0xff]  ;;  %s868_s19 = smov 124  }
  0x13   :  { %v35_v2 = vld [vmem:[%s973_s1 + $0x10] sm:$0xff]  ;;  %v777_v3 = vpack.c.bf16 %v34_v1, %v33_v0  ;;  %v36_v4 = vld [vmem:[%s973_s1 + $0x18] sm:$0xff]  ;;  %v31_v5 = vld [vmem:[%s972_s0] sm:$0xff]  ;;  %vm335_vm1 = vcmask 31744   ;;  %s869_s20 = smov 32   ;;  %s870_s21 = smov 96  }
  0x14   :  { %v781_v6 = vpack.c.bf16 %v36_v4, %v35_v2  ;;  %719 = vmatprep.mubr.msk.f32.mxu0 %vm42_vm0, %v31_v5  ;;  %v126_v7 = vld [vmem:[#allocation2] sm:$0xff]  ;;  %v127_v8 = vld [vmem:[#allocation2 + $0x8] sm:$0xff]  ;;  %v128_v11 = vld [vmem:[#allocation2 + $0x10] sm:$0xff]  ;;  %vm642_vm2 = vcmask 64512   ;;  %vm645_vm3 = vcmask 97280   ;;  %vm648_vm4 = vcmask 130048  }
  0x15   :  { %778 = vmatprep.subr.bf16.mxu0 %v777_v3  ;;  %v785_v9 = vpack.c.bf16 %v127_v8, %v126_v7  ;;  %v32_v10 = vld [vmem:[%s972_s0 + $0x8] sm:$0xff]  ;;  %v129_v12 = vld [vmem:[#allocation2 + $0x18] sm:$0xff]  ;;  %v220_v15 = vld [vmem:[#allocation2 + $0x28] sm:$0xff]  ;;  %s867_s0 = smov 108  }
  0x16   :  { %780 = vmatpush3.bf16.msra.mxu0 %v777_v3  ;;  %v789_v13 = vpack.c.bf16 %v129_v12, %v128_v11  ;;  %v219_v14 = vld [vmem:[#allocation2 + $0x20] sm:$0xff]  ;;  %v658_v17 = vld [vmem:[%s975_s3] ss:$0 sm:$0xff]  ;;  %v221_v24 = vld [vmem:[#allocation2 + $0x30] sm:$0xff]  ;;  %317 = vrot.lane.b32.xlu0 %v31_v5, %s867_s0 }
  0x17   :  { %782 = vmatprep.subr.bf16.mxu0 %v781_v6  ;;  %786 = vmatprep.subr.bf16.mxu1 %v785_v9  ;;  %v793_v16 = vpack.c.bf16 %v220_v15, %v219_v14  ;;  %v222_v25 = vld [vmem:[#allocation2 + $0x38] sm:$0xff]  ;;  %v339_v34 = vld [vmem:[#allocation2 + $0x40] sm:$0xff]  ;;  %v340_v35 = vld [vmem:[#allocation2 + $0x48] sm:$0xff] }
  0x18   :  { %788 = vmatpush3.bf16.msra.mxu1 %v785_v9  ;;  %v797_v26 = vpack.c.bf16 %v222_v25, %v221_v24  ;;  %v661_v27 = vld [vmem:[%s975_s3 + $0x1] ss:$0 sm:$0xff]  ;;  %v801_v36 = vpack.c.bf16 %v340_v35, %v339_v34  ;;  %v664_v37 = vld [vmem:[%s975_s3 + $0x2] ss:$0 sm:$0xff]  ;;  %v341_v48 = vld [vmem:[#allocation2 + $0x50] sm:$0xff] }
  0x19   :  { %790 = vmatprep.subr.bf16.mxu1 %v789_v13  ;;  %v342_v49 = vld [vmem:[#allocation2 + $0x58] sm:$0xff]  ;;  %v437_v1 = vld [vmem:[#allocation2 + $0x60] sm:$0xff]  ;;  %v438_v2 = vld [vmem:[#allocation2 + $0x68] sm:$0xff] }
  0x1a   :  { %784 = vmatpush3.bf16.msra.mxu0 %v781_v6  ;;  %319 = vrot.lane.b32.xlu0 %v32_v10, %s867_s0  ;;  %v805_v50 = vpack.c.bf16 %v342_v49, %v341_v48  ;;  %v439_v3 = vld [vmem:[#allocation2 + $0x70] sm:$0xff]  ;;  %v809_v4 = vpack.c.bf16 %v438_v2, %v437_v1  ;;  %v440_v5 = vld [vmem:[#allocation2 + $0x78] sm:$0xff]  ;;  %v534_v8 = vld [vmem:[#allocation2 + $0x80] sm:$0xff] }
  0x1b   :  { %794 = vmatprep.subr.bf16.mxu0 %v793_v16  ;;  %v813_v6 = vpack.c.bf16 %v440_v5, %v439_v3  ;;  %v535_v9 = vld [vmem:[#allocation2 + $0x88] sm:$0xff] }
  0x1c   :  { %792 = vmatpush3.bf16.msra.mxu1 %v789_v13  ;;  %v817_v12 = vpack.c.bf16 %v535_v9, %v534_v8 }
  0x1d   :  { %720 = vmatmul.mubr.msk.f32.vlgmr.msra.gmra.mrb[0].mxu0 %vm42_vm0, %v32_v10  ;;  %802 = vmatprep.subr.bf16.mxu1 %v801_v36 }
  0x1e   :  { %796 = vmatpush3.bf16.msra.mxu0 %v793_v16 }
  0x1f   :  { %798 = vmatprep.subr.bf16.mxu0 %v797_v26 }
  0x22   :  { %800 = vmatpush3.bf16.msra.mxu0 %v797_v26 }
  0x23   :  { %810 = vmatprep.subr.bf16.mxu0 %v809_v4 }
  0x88   :  { %v318_v51 = vpop.permute.xlu0 %317 }
  0x8c   :  { %v320_v55 = vpop.permute.xlu0 %319 }
  0xf0   :  { %v721_v18 = vpop.f32.mrb[0].mxu0 }
  0xf1   :  { %v932_v19 = vadd.f32 %v721_v18, %v658_v17  ;;  %v115_v20 = vpop.f32.mrb[1].mxu0  ;;  %v536_v18 = vld [vmem:[#allocation2 + $0x90] sm:$0xff] }
  0xf2   :  { %v934_v21 = vadd.f32 %v658_v17, %v115_v20 }
  0xf3   :  { %v125_v23 = vmax.f32 %v932_v19, 0.0 }
  0xf4   :  { %v124_v22 = vmax.f32 %v934_v21, 0.0 }
  0xf6   :  { %730 = vmatprep.mubr.msk.f32.mxu1 %vm42_vm0, %v124_v22 }
  0xf7   :  { %731 = vmatmul.mubr.msk.f32.vlgmr.msra.gmra.mrb[0].mxu1 %vm42_vm0, %v125_v23 }
  0xf8   :  { %804 = vmatpush3.bf16.msra.mxu1 %v801_v36 }
  0xf9   :  { %806 = vmatprep.subr.bf16.mxu1 %v805_v50 }
  0xfc   :  { %808 = vmatpush3.bf16.msra.mxu1 %v805_v50 }
  0xfd   :  { %818 = vmatprep.subr.bf16.mxu1 %v817_v12 }
 0x1ca   :  { %v732_v28 = vpop.f32.mrb[0].mxu1 }
 0x1cb   :  { %v213_v29 = vadd.f32 %v732_v28, %v661_v27  ;;  %v207_v30 = vpop.f32.mrb[1].mxu1  ;;  %v672_v28 = vld [vmem:[%s975_s3 + $0x4] ss:$0 sm:$0xff] }
 0x1cc   :  { %v208_v31 = vadd.f32 %v661_v27, %v207_v30 }
 0x1cd   :  { %v217_v33 = vmax.f32 %v213_v29, 0.0 }
 0x1ce   :  { %v216_v32 = vmax.f32 %v208_v31, 0.0 }
 0x1d0   :  { %741 = vmatprep.mubr.msk.f32.mxu0 %vm42_vm0, %v216_v32 }
 0x1d1   :  { %742 = vmatmul.mubr.msk.f32.vlgmr.msra.gmra.mrb[2].mxu0 %vm42_vm0, %v217_v33 }
 0x1d2   :  { %812 = vmatpush3.bf16.msra.mxu0 %v809_v4 }
 0x1d3   :  { %814 = vmatprep.subr.bf16.mxu0 %v813_v6 }
 0x1d6   :  { %816 = vmatpush3.bf16.msra.mxu0 %v813_v6 }
 0x2a4   :  { %v743_v38 = vpop.f32.mrb[2].mxu0 }
 0x2a5   :  { %v306_v39 = vadd.f32 %v743_v38, %v664_v37  ;;  %v300_v40 = vpop.f32.mrb[3].mxu0 }
 0x2a6   :  { %v301_v41 = vadd.f32 %v664_v37, %v300_v40 }
 0x2a7   :  { %v310_v42 = vmax.f32 %v306_v39, -4.0 }
 0x2a8   :  { %v309_v43 = vmax.f32 %v301_v41, -4.0 }
 0x2a9   :  { %v312_v44 = vmin.f32 %v310_v42, 15.0 }
 0x2aa   :  { %v311_v45 = vmin.f32 %v309_v43, 15.0 }
 0x2ab   :  { %v315_v46 = vmul.f32 1.442695, %v312_v44 }
 0x2ac   :  { %v313_v47 = vmul.f32 1.442695, %v311_v45 }
 0x2ae   :  { %832 = vpow2.f32 %v313_v47 }
 0x2af   :  { %834 = vpow2.f32 %v315_v46 }
 0x2b8   :  { %v833_v52 = vpop.eup %832 }
 0x2b9   :  { %v323_v53 = vmul.f32 %v833_v52, %v318_v51  ;;  %v835_v54 = vpop.eup %834 }
 0x2ba   :  { %v324_v56 = vmul.f32 %v835_v54, %v320_v55 }
 0x2bb   :  { %327 = vrot.lane.b32.xlu1 %v323_v53, %s868_s19 }
 0x2bf   :  { %329 = vrot.lane.b32.xlu1 %v324_v56, %s868_s19 }
 0x32d   :  { %v328_v57 = vpop.permute.xlu1 %327 }
 0x32e   :  { %v333_v58 = vadd.f32 %v328_v57, %v301_v41 }
 0x330   :  { %v336_v59 = vsel %vm335_vm1, %v333_v58, 0.0 }
 0x331   :  { %752 = vmatprep.mubr.msk.f32.mxu1 %vm42_vm0, %v336_v59  ;;  %v330_v60 = vpop.permute.xlu1 %329 }
 0x332   :  { %v334_v61 = vadd.f32 %v330_v60, %v306_v39 }
 0x334   :  { %v337_v62 = vsel %vm335_vm1, %v334_v61, 0.0 }
 0x335   :  { %753 = vmatmul.mubr.msk.f32.vlgmr.msra.gmra.mrb[2].mxu1 %vm42_vm0, %v337_v62 }
 0x336   :  { %820 = vmatpush3.bf16.msra.mxu1 %v817_v12 }
 0x408   :  { %v754_v63 = vpop.f32.mrb[2].mxu1 }
 0x409   :  { %428 = vrot.lane.b32.xlu1 %v754_v63, %s869_s20  ;;  %v415_v0 = vpop.f32.mrb[3].mxu1 }
 0x40a   :  { %426 = vrot.lane.b32.xlu0 %v415_v0, %s869_s20 }
 0x47b   :  { %v429_v7 = vpop.permute.xlu1 %428 }
 0x47c   :  { %v433_v10 = vadd.f32 %v429_v7, %v932_v19  ;;  %v427_v11 = vpop.permute.xlu0 %426  ;;  %v537_v19 = vld [vmem:[#allocation2 + $0x98] sm:$0xff] }
 0x47d   :  { %v432_v13 = vadd.f32 %v427_v11, %v934_v21  ;;  %v821_v20 = vpack.c.bf16 %v537_v19, %v536_v18  ;;  %v669_v21 = vld [vmem:[%s975_s3 + $0x3] ss:$0 sm:$0xff] }
 0x47e   :  { %v435_v14 = vmax.f32 %v433_v10, 0.0 }
 0x47f   :  { %v434_v15 = vmax.f32 %v432_v13, 0.0  ;;  %822 = vmatprep.subr.bf16.mxu1 %v821_v20 }
 0x480   :  { %450 = vrot.lane.b32.xlu1 %v435_v14, %s870_s21  ;;  %824 = vmatpush3.bf16.msra.mxu1 %v821_v20 }
 0x481   :  { %448 = vrot.lane.b32.xlu0 %v434_v15, %s870_s21 }
 0x484   :  { %630 = vrot.lane.b32.xlu1 %v306_v39, %s866_s26 }
 0x485   :  { %628 = vrot.lane.b32.xlu0 %v301_v41, %s866_s26 }
 0x488   :  { %638 = vrot.lane.b32.xlu1 %v835_v54, %s866_s26 }
 0x489   :  { %636 = vrot.lane.b32.xlu0 %v833_v52, %s866_s26 }
 0x4f2   :  { %v451_v17 = vpop.permute.xlu1 %450 }
 0x4f3   :  { %v449_v16 = vpop.permute.xlu0 %448 }
 0x4f4   :  { %763 = vmatprep.mubr.msk.f32.mxu0 %vm42_vm0, %v449_v16 }
 0x4f5   :  { %764 = vmatmul.mubr.msk.f32.vlgmr.msra.gmra.mrb[4].mxu0 %vm42_vm0, %v451_v17 }
 0x4f6   :  { %v631_v33 = vpop.permute.xlu1 %630 }
 0x4f7   :  { %v629_v34 = vpop.permute.xlu0 %628 }
 0x4fa   :  { %v639_v37 = vpop.permute.xlu1 %638 }
 0x4fb   :  { %v637_v39 = vpop.permute.xlu0 %636 }
 0x5c8   :  { %v765_v22 = vpop.f32.mrb[4].mxu0 }
 0x5c9   :  { %v528_v23 = vadd.f32 %v765_v22, %v669_v21  ;;  %v522_v24 = vpop.f32.mrb[5].mxu0 }
 0x5ca   :  { %v523_v25 = vadd.f32 %v669_v21, %v522_v24 }
 0x5cb   :  { %v532_v27 = vmax.f32 %v528_v23, 0.0 }
 0x5cc   :  { %v531_v26 = vmax.f32 %v523_v25, 0.0 }
 0x5ce   :  { %774 = vmatprep.mubr.msk.f32.mxu1 %vm42_vm0, %v531_v26 }
 0x5cf   :  { %775 = vmatmul.mubr.msk.f32.vlgmr.msra.gmra.mrb[4].mxu1 %vm42_vm0, %v532_v27 }
 0x6a2   :  { %v776_v29 = vpop.f32.mrb[4].mxu1 }
 0x6a3   :  { %v621_v30 = vadd.f32 %v776_v29, %v672_v28  ;;  %v615_v31 = vpop.f32.mrb[5].mxu1 }
 0x6a4   :  { %v616_v32 = vadd.f32 %v672_v28, %v615_v31 }
 0x6a5   :  { %836 = vtanh.f32 %v621_v30 }
 0x6a6   :  { %838 = vtanh.f32 %v616_v32 }
 0x6af   :  { %v837_v35 = vpop.eup %836 }
 0x6b0   :  { %v839_v36 = vpop.eup %838  ;;  %v644_v38 = vsel %vm642_vm2, %v837_v35, %v631_v33 }
 0x6b1   :  { %v647_v40 = vsel %vm645_vm3, %v644_v38, %v639_v37  ;;  %v643_v41 = vsel %vm642_vm2, %v839_v36, %v629_v34 }
 0x6b2   :  { %v650_v42 = vsel %vm648_vm4, %v647_v40, 0.0  ;;  %v646_v43 = vsel %vm645_vm3, %v643_v41, %v637_v39 }
 0x6b3   :  { %652 = vst [vmem:[%s976_s4 + $0x8] sm:$0xff] %v650_v42  ;;  %v649_v44 = vsel %vm648_vm4, %v646_v43, 0.0 }
 0x6b4   :  { %651 = vst [vmem:[%s976_s4] sm:$0xff] %v649_v44 }
 0x6b5   :  { %657 = vsyncpa [#allocation3], 1 }

</bundles_post_ra>
